<compile_context>
chip_gen: v5e
topology: v5e:2x2
jax: 0.10.0
libtpu: 0.0.40
codegen_flags: <defaults>
</compile_context>

<pallas_src>
import functools

import jax
import jax.numpy as jnp
from jax.experimental import pallas as pl
from jax.experimental.pallas import tpu as pltpu


def _round_up(x, m):
    return ((x + m - 1) // m) * m


# Tiling heuristic:
#   * per-grid-step overhead dominates the tiny per-step compute here, so
#     tiles should be as large as comfortably possible;
#   * single tile for small/medium batches (v5e/v6e have 1 TensorCore: the
#     grid is a serial loop, fewer steps is strictly better);
#   * for large batches, an (ideally even) number of lane-aligned tiles so
#     v7x's two TensorCores split the "parallel" batch axis evenly, and so
#     partial blocks still satisfy the (8,128) BlockSpec rule.
_SINGLE_TILE_MAX = 1024      # whole batch in one tile up to this many rows
_TILE_CAP = 2048             # max rows per tile (~8.5 MiB double-buffered VMEM)


def _auto_tile_b(batch):
    if batch <= _SINGLE_TILE_MAX:
        return batch                      # 1 grid step; blocks == full dims
    n = 2                                 # even step count for v7x megacore
    while pl.cdiv(batch, n) > _TILE_CAP:
        n += 2
    return _round_up(pl.cdiv(batch, n), 128)


# ---------------------------------------------------------------------------
# Pallas kernel: the full 3-layer MLP for one batch tile.
# ---------------------------------------------------------------------------
def _mlp_critic_kernel(obs_ref, act_ref, w1a_ref, w1b_ref, b1_ref,
                       w2_ref, b2_ref, w3_ref, b3_ref, q_ref):
    cdt = w1a_ref.dtype                   # matmul compute dtype; accum is f32

    # Layer 1 with the obs/act concat fused via split W1:
    #   h = obs @ W1[:obs_dim] + act @ W1[obs_dim:] + b1 ; ReLU
    # TODO(synk): an in-VMEM concat + single (tb,16)@(16,H1) dot is a possible
    # second-order follow-up; MXU is not the binding slot here.
    h = jnp.dot(obs_ref[...].astype(cdt), w1a_ref[...],
                preferred_element_type=jnp.float32)
    h = h + jnp.dot(act_ref[...].astype(cdt), w1b_ref[...],
                    preferred_element_type=jnp.float32)
    h = jnp.maximum(h + b1_ref[...], 0.0)         # bias + ReLU in f32

    # Layer 2
    h = jnp.dot(h.astype(cdt), w2_ref[...], preferred_element_type=jnp.float32)
    h = jnp.maximum(h + b2_ref[...], 0.0)

    # Layer 3 (out_features == 1): VPU multiply + lane reduction instead of a
    # lane-sparse (tb, H2) @ (H2, 1) MXU matmul. b3 is an SMEM scalar.
    q_col = jnp.sum(h * w3_ref[...], axis=-1, keepdims=True) + b3_ref[0]

    # Lane-dense store: transpose the (tb, 1) column to a (1, tb) row so the
    # writeback is full-width / one contiguous DMA instead of masked vst.msk.
    q_ref[...] = jnp.transpose(q_col).astype(q_ref.dtype)


# ---------------------------------------------------------------------------
# One-time parameter preprocessing (hoisted out of the per-call path).
# ---------------------------------------------------------------------------
def prepare_critic_params(params, obs_dim, compute_dtype=jnp.float32):
    """Convert torch-layout params (w1,b1,w2,b2,w3,b3) into kernel-ready form.

    Call ONCE (outside the training/inference step loop): splits W1 at obs_dim
    so the concat never materializes, casts matmul weights to `compute_dtype`,
    keeps biases / the final W3 row in f32, and flattens b3 to an SMEM scalar.
    """
    w1, b1, w2, b2, w3, b3 = params
    return (
        w1[:obs_dim].astype(compute_dtype),        # W1a  (obs_dim, H1)
        w1[obs_dim:].astype(compute_dtype),        # W1b  (act_dim, H1)
        b1.reshape(1, -1).astype(jnp.float32),     # b1   (1, H1)
        w2.astype(compute_dtype),                  # W2   (H1, H2)
        b2.reshape(1, -1).astype(jnp.float32),     # b2   (1, H2)
        w3.reshape(1, -1).astype(jnp.float32),     # W3 as a row (1, H2)
        b3.reshape(-1).astype(jnp.float32),        # b3 scalar (1,) -> SMEM
    )


# ---------------------------------------------------------------------------
# Forward wrapper: set up grid / BlockSpecs and call the kernel.
# ---------------------------------------------------------------------------
@functools.partial(jax.jit, static_argnames=("tile_b",))
def mlp_critic_forward(obs, act, kernel_params, *, tile_b=None):
    w1a, w1b, b1, w2, b2, w3_row, b3 = kernel_params
    B, obs_dim = obs.shape
    act_dim = act.shape[-1]
    H1 = w1a.shape[1]
    H2 = w2.shape[1]

    if tile_b is None:
        tile_b = _auto_tile_b(B)
    tile_b = int(tile_b)

    # Ragged tail handled by Pallas (clamped input DMA, masked output store):
    # no jnp.pad of obs/act and no trailing slice of q.
    grid = (pl.cdiv(B, tile_b),)

    def resident(shape):                  # same full block at every grid step
        return pl.BlockSpec(shape, lambda i: (0, 0))

    q_row = pl.pallas_call(
        _mlp_critic_kernel,
        out_shape=jax.ShapeDtypeStruct((1, B), jnp.float32),   # lane-dense
        grid=grid,
        in_specs=[
            pl.BlockSpec((tile_b, obs_dim), lambda i: (i, 0)),   # obs tile
            pl.BlockSpec((tile_b, act_dim), lambda i: (i, 0)),   # act tile
            resident((obs_dim, H1)),                             # W1[:obs_dim]
            resident((act_dim, H1)),                             # W1[obs_dim:]
            resident((1, H1)),                                   # b1
            resident((H1, H2)),                                  # W2
            resident((1, H2)),                                   # b2
            resident((1, H2)),                                   # W3 row
            pl.BlockSpec(memory_space=pltpu.MemorySpace.SMEM),   # b3 scalar
        ],
        out_specs=pl.BlockSpec((1, tile_b), lambda i: (0, i)),
        compiler_params=pltpu.CompilerParams(
            dimension_semantics=("parallel",)),
    )(obs, act, w1a, w1b, b1, w2, b2, w3_row, b3)

    # (1, B) -> (B, 1): identical flat order, so this reshape is a free bitcast.
    return q_row.reshape(B, 1)


# ---------------------------------------------------------------------------
# Deterministic parameter init (mirrors nn.init.orthogonal_ with gain=1.0,
# biases zero). Synthetic init — no checkpoint loading.
# ---------------------------------------------------------------------------
def _orthogonal(key, out_dim, in_dim, gain=1.0):
    n = max(out_dim, in_dim)
    a = jax.random.normal(key, (n, n), dtype=jnp.float32)
    q, r = jnp.linalg.qr(a)
    q = q * jnp.sign(jnp.diagonal(r))[None, :]
    w = gain * q[:out_dim, :in_dim]                  # torch layout (out, in)
    return w.T.astype(jnp.float32)                   # kernel layout (in, out)


def init_mlp_critic_params(key, obs_dim, act_dim, hidden_sizes):
    d_in = obs_dim + act_dim
    sizes = [d_in] + list(hidden_sizes) + [1]
    params = []
    for i in range(len(sizes) - 1):
        key, sub = jax.random.split(key)
        w = _orthogonal(sub, sizes[i + 1], sizes[i], gain=1.0)
        b = jnp.zeros((1, sizes[i + 1]), dtype=jnp.float32)
        params += [w, b]
    return tuple(params)


# Pure-JAX references for sanity checking.
def _reference_forward(obs, act, params):
    """Exact torch-style f32 forward."""
    w1, b1, w2, b2, w3, b3 = params
    x = jnp.concatenate([obs, act], axis=-1)
    h = jnp.maximum(x @ w1 + b1, 0.0)
    h = jnp.maximum(h @ w2 + b2, 0.0)
    return h @ w3 + b3


def _reference_forward_mixed(obs, act, params, compute_dtype):
    """Mirrors the kernel numerics: compute_dtype matmul operands, f32 accum,
    split W1, f32 bias/ReLU, VPU-style final reduction."""
    w1, b1, w2, b2, w3, b3 = params
    obs_dim = obs.shape[-1]
    w1a, w1b = w1[:obs_dim], w1[obs_dim:]
    h = jnp.dot(obs.astype(compute_dtype), w1a.astype(compute_dtype),
                preferred_element_type=jnp.float32)
    h = h + jnp.dot(act.astype(compute_dtype), w1b.astype(compute_dtype),
                    preferred_element_type=jnp.float32)
    h = jnp.maximum(h + b1, 0.0)
    h = jnp.dot(h.astype(compute_dtype), w2.astype(compute_dtype),
                preferred_element_type=jnp.float32)
    h = jnp.maximum(h + b2, 0.0)
    return jnp.sum(h * w3.reshape(1, -1), axis=-1, keepdims=True) + b3


if __name__ == "__main__":
    key = jax.random.PRNGKey(0)

    obs_dim = 12
    act_dim = 4
    hidden_sizes = [32, 32]      # hidden_acts = ReLU

    k_obs, k_act, k_par = jax.random.split(key, 3)
    params = init_mlp_critic_params(k_par, obs_dim, act_dim, hidden_sizes)

    # One-time weight preprocessing, hoisted out of the per-call forward.
    kparams_f32 = prepare_critic_params(params, obs_dim, jnp.float32)
    kparams_bf16 = prepare_critic_params(params, obs_dim, jnp.bfloat16)

    # --- small batch, single tile -----------------------------------------
    batch = 16
    obs = jax.random.normal(k_obs, (batch, obs_dim), dtype=jnp.float32)
    act = jax.random.normal(k_act, (batch, act_dim), dtype=jnp.float32)
    q_ref = _reference_forward(obs, act, params)

    q_f32 = jax.block_until_ready(mlp_critic_forward(obs, act, kparams_f32))
    assert q_f32.shape == (batch, 1)
    assert jnp.allclose(q_f32, q_ref, atol=1e-4, rtol=1e-4)

    # bf16-MXU path (f32 accumulation): tight vs. a numerics-matched reference,
    # loose vs. the pure-f32 torch reference.
    q_bf16 = jax.block_until_ready(mlp_critic_forward(obs, act, kparams_bf16))
    q_ref_mixed = _reference_forward_mixed(obs, act, params, jnp.bfloat16)
    assert q_bf16.shape == (batch, 1)
    assert jnp.allclose(q_bf16, q_ref_mixed, atol=1e-3, rtol=1e-3)
    assert jnp.allclose(q_bf16, q_ref, atol=1e-1, rtol=1e-1)

    # --- batch not a multiple of 8: single tile, blocks == full dims -------
    k_o2, k_a2 = jax.random.split(jax.random.PRNGKey(1))
    obs2 = jax.random.normal(k_o2, (100, obs_dim), dtype=jnp.float32)
    act2 = jax.random.normal(k_a2, (100, act_dim), dtype=jnp.float32)
    q2 = jax.block_until_ready(mlp_critic_forward(obs2, act2, kparams_f32))
    assert q2.shape == (100, 1)
    assert jnp.allclose(q2, _reference_forward(obs2, act2, params),
                        atol=1e-4, rtol=1e-4)

    # --- multi-tile grid with a ragged tail block (no pad, masked store) ---
    k_o3, k_a3 = jax.random.split(jax.random.PRNGKey(2))
    obs3 = jax.random.normal(k_o3, (300, obs_dim), dtype=jnp.float32)
    act3 = jax.random.normal(k_a3, (300, act_dim), dtype=jnp.float32)
    q3 = jax.block_until_ready(
        mlp_critic_forward(obs3, act3, kparams_f32, tile_b=128))
    assert q3.shape == (300, 1)
    assert jnp.allclose(q3, _reference_forward(obs3, act3, params),
                        atol=1e-4, rtol=1e-4)

    print("KERNEL_OK")
</pallas_src>

<mosaic_0001>
module attributes {stable_mosaic.version = 11 : i64} {
  func.func @_mlp_critic_kernel(%arg0: i32, %arg1: memref<16x12xf32, #tpu.memory_space<vmem>>, %arg2: memref<16x4xf32, #tpu.memory_space<vmem>>, %arg3: memref<12x32xf32, #tpu.memory_space<vmem>>, %arg4: memref<4x32xf32, #tpu.memory_space<vmem>>, %arg5: memref<1x32xf32, #tpu.memory_space<vmem>>, %arg6: memref<32x32xf32, #tpu.memory_space<vmem>>, %arg7: memref<1x32xf32, #tpu.memory_space<vmem>>, %arg8: memref<1x32xf32, #tpu.memory_space<vmem>>, %arg9: memref<1xf32, #tpu.memory_space<smem>>, %arg10: memref<1x16xf32, #tpu.memory_space<vmem>>) attributes {dimension_semantics = [#tpu.dimension_semantics<parallel>], iteration_bounds = array<i64: 1>, scalar_prefetch = 0 : i64, scratch_operands = 0 : i64, tpu.core_type = #tpu.core_type<tc>, window_params = [{transform_indices = @transform_0, window_bounds = array<i64: 16, 12>}, {transform_indices = @transform_1, window_bounds = array<i64: 16, 4>}, {pipeline_mode = #tpu.pipeline_mode<synchronous>, transform_indices = @transform_2, window_bounds = array<i64: 12, 32>}, {pipeline_mode = #tpu.pipeline_mode<synchronous>, transform_indices = @transform_3, window_bounds = array<i64: 4, 32>}, {pipeline_mode = #tpu.pipeline_mode<synchronous>, transform_indices = @transform_4, window_bounds = array<i64: 1, 32>}, {pipeline_mode = #tpu.pipeline_mode<synchronous>, transform_indices = @transform_5, window_bounds = array<i64: 32, 32>}, {pipeline_mode = #tpu.pipeline_mode<synchronous>, transform_indices = @transform_6, window_bounds = array<i64: 1, 32>}, {pipeline_mode = #tpu.pipeline_mode<synchronous>, transform_indices = @transform_7, window_bounds = array<i64: 1, 32>}, {transform_indices = @transform_8, window_bounds = array<i64: 1>}, {transform_indices = @transform_9, window_bounds = array<i64: 1, 16>}]} {
    %c0 = arith.constant 0 : index
    %c0_0 = arith.constant 0 : index
    %0 = vector.load %arg1[%c0, %c0_0] : memref<16x12xf32, #tpu.memory_space<vmem>>, vector<16x12xf32>
    %c0_1 = arith.constant 0 : index
    %c0_2 = arith.constant 0 : index
    %1 = vector.load %arg3[%c0_1, %c0_2] : memref<12x32xf32, #tpu.memory_space<vmem>>, vector<12x32xf32>
    %cst = arith.constant dense<0.000000e+00> : vector<16x32xf32>
    %2 = tpu.matmul %0, %1, %cst {dimension_numbers = #tpu.dot_dimension_numbers<[1], [0], [0], [1], [0, 0, 1, 1], [], []>} : vector<16x12xf32>, vector<12x32xf32>, vector<16x32xf32> -> vector<16x32xf32>
    %c0_3 = arith.constant 0 : index
    %c0_4 = arith.constant 0 : index
    %3 = vector.load %arg2[%c0_3, %c0_4] : memref<16x4xf32, #tpu.memory_space<vmem>>, vector<16x4xf32>
    %c0_5 = arith.constant 0 : index
    %c0_6 = arith.constant 0 : index
    %4 = vector.load %arg4[%c0_5, %c0_6] : memref<4x32xf32, #tpu.memory_space<vmem>>, vector<4x32xf32>
    %cst_7 = arith.constant dense<0.000000e+00> : vector<16x32xf32>
    %5 = tpu.matmul %3, %4, %cst_7 {dimension_numbers = #tpu.dot_dimension_numbers<[1], [0], [0], [1], [0, 0, 1, 1], [], []>} : vector<16x4xf32>, vector<4x32xf32>, vector<16x32xf32> -> vector<16x32xf32>
    %6 = arith.addf %2, %5 : vector<16x32xf32>
    %c0_8 = arith.constant 0 : index
    %c0_9 = arith.constant 0 : index
    %7 = vector.load %arg5[%c0_8, %c0_9] : memref<1x32xf32, #tpu.memory_space<vmem>>, vector<1x32xf32>
    %8 = vector.broadcast %7 : vector<1x32xf32> to vector<16x32xf32>
    %9 = arith.addf %6, %8 : vector<16x32xf32>
    %cst_10 = arith.constant 0.000000e+00 : f32
    %10 = vector.broadcast %cst_10 : f32 to vector<16x32xf32>
    %11 = arith.maximumf %9, %10 : vector<16x32xf32>
    %c0_11 = arith.constant 0 : index
    %c0_12 = arith.constant 0 : index
    %12 = vector.load %arg6[%c0_11, %c0_12] : memref<32x32xf32, #tpu.memory_space<vmem>>, vector<32x32xf32>
    %cst_13 = arith.constant dense<0.000000e+00> : vector<16x32xf32>
    %13 = tpu.matmul %11, %12, %cst_13 {dimension_numbers = #tpu.dot_dimension_numbers<[1], [0], [0], [1], [0, 0, 1, 1], [], []>} : vector<16x32xf32>, vector<32x32xf32>, vector<16x32xf32> -> vector<16x32xf32>
    %c0_14 = arith.constant 0 : index
    %c0_15 = arith.constant 0 : index
    %14 = vector.load %arg7[%c0_14, %c0_15] : memref<1x32xf32, #tpu.memory_space<vmem>>, vector<1x32xf32>
    %15 = vector.broadcast %14 : vector<1x32xf32> to vector<16x32xf32>
    %16 = arith.addf %13, %15 : vector<16x32xf32>
    %cst_16 = arith.constant 0.000000e+00 : f32
    %17 = vector.broadcast %cst_16 : f32 to vector<16x32xf32>
    %18 = arith.maximumf %16, %17 : vector<16x32xf32>
    %c0_17 = arith.constant 0 : index
    %c0_18 = arith.constant 0 : index
    %19 = vector.load %arg8[%c0_17, %c0_18] : memref<1x32xf32, #tpu.memory_space<vmem>>, vector<1x32xf32>
    %20 = vector.broadcast %19 : vector<1x32xf32> to vector<16x32xf32>
    %21 = arith.mulf %18, %20 : vector<16x32xf32>
    %cst_19 = arith.constant dense<0.000000e+00> : vector<16xf32>
    %22 = vector.multi_reduction <add>, %21, %cst_19 [1] : vector<16x32xf32> to vector<16xf32>
    %23 = vector.shape_cast %22 : vector<16xf32> to vector<16x1xf32>
    %c0_20 = arith.constant 0 : index
    %24 = memref.load %arg9[%c0_20] : memref<1xf32, #tpu.memory_space<smem>>
    %25 = vector.broadcast %24 : f32 to vector<16x1xf32>
    %26 = arith.addf %23, %25 : vector<16x1xf32>
    %27 = tpu.transpose %26, [1, 0] : vector<16x1xf32> -> vector<1x16xf32>
    %c0_21 = arith.constant 0 : index
    %c0_22 = arith.constant 0 : index
    %28 = vector.load %arg10[%c0_21, %c0_22] : memref<1x16xf32, #tpu.memory_space<vmem>>, vector<1x16xf32>
    tpu.vector_store %arg10[%c0_21, %c0_22], %27 {strides = array<i32>} : memref<1x16xf32, #tpu.memory_space<vmem>>, vector<1x16xf32>,
    return
  }
  func.func @transform_0(%arg0: i32) -> (i32, i32) {
    %c0_i32 = arith.constant 0 : i32
    %c0_i32_0 = arith.constant 0 : i32
    return %arg0, %c0_i32 : i32, i32
  }
  func.func @transform_1(%arg0: i32) -> (i32, i32) {
    %c0_i32 = arith.constant 0 : i32
    %c0_i32_0 = arith.constant 0 : i32
    return %arg0, %c0_i32 : i32, i32
  }
  func.func @transform_2(%arg0: i32) -> (i32, i32) {
    %c0_i32 = arith.constant 0 : i32
    %c0_i32_0 = arith.constant 0 : i32
    %c0_i32_1 = arith.constant 0 : i32
    return %c0_i32, %c0_i32_0 : i32, i32
  }
  func.func @transform_3(%arg0: i32) -> (i32, i32) {
    %c0_i32 = arith.constant 0 : i32
    %c0_i32_0 = arith.constant 0 : i32
    %c0_i32_1 = arith.constant 0 : i32
    return %c0_i32, %c0_i32_0 : i32, i32
  }
  func.func @transform_4(%arg0: i32) -> (i32, i32) {
    %c0_i32 = arith.constant 0 : i32
    %c0_i32_0 = arith.constant 0 : i32
    %c0_i32_1 = arith.constant 0 : i32
    return %c0_i32, %c0_i32_0 : i32, i32
  }
  func.func @transform_5(%arg0: i32) -> (i32, i32) {
    %c0_i32 = arith.constant 0 : i32
    %c0_i32_0 = arith.constant 0 : i32
    %c0_i32_1 = arith.constant 0 : i32
    return %c0_i32, %c0_i32_0 : i32, i32
  }
  func.func @transform_6(%arg0: i32) -> (i32, i32) {
    %c0_i32 = arith.constant 0 : i32
    %c0_i32_0 = arith.constant 0 : i32
    %c0_i32_1 = arith.constant 0 : i32
    return %c0_i32, %c0_i32_0 : i32, i32
  }
  func.func @transform_7(%arg0: i32) -> (i32, i32) {
    %c0_i32 = arith.constant 0 : i32
    %c0_i32_0 = arith.constant 0 : i32
    %c0_i32_1 = arith.constant 0 : i32
    return %c0_i32, %c0_i32_0 : i32, i32
  }
  func.func @transform_8(%arg0: i32) -> i32 {
    %c0_i32 = arith.constant 0 : i32
    %c0_i32_0 = arith.constant 0 : i32
    return %c0_i32 : i32
  }
  func.func @transform_9(%arg0: i32) -> (i32, i32) {
    %c0_i32 = arith.constant 0 : i32
    %c0_i32_0 = arith.constant 0 : i32
    return %c0_i32, %arg0 : i32, i32
  }
}

</mosaic_0001>

<bundles_post_ra>
// kernel: mlp_critic_forward.1
= control target key start
LH: loop header
LB: loop body
LE: loop exit
PB: predicated region body
PF: predicated region fallthrough
CT: control target
= control target key end

     0   :  { %15 = vsyncpa [#allocation4], 0  ;;  %s450_s0 = inlined_call_operand.vmem [shape: f32[16,12], index: 0, kind: input, shape index: {}]   ;;  %s451_s1 = inlined_call_operand.vmem [shape: f32[16,4], index: 1, kind: input, shape index: {}]   ;;  %s452_s2 = inlined_call_operand.hbm [shape: f32[12,32], index: 2, kind: input, shape index: {}]   ;;  %s453_s3 = inlined_call_operand.vmem [shape: f32[4,32], index: 3, kind: input, shape index: {}]   ;;  %s454_s4 = inlined_call_operand.vmem [shape: f32[1,32], index: 4, kind: input, shape index: {}]   ;;  %s455_s5 = inlined_call_operand.hbm [shape: f32[32,32], index: 5, kind: input, shape index: {}]   ;;  %s456_s6 = inlined_call_operand.vmem [shape: f32[1,32], index: 6, kind: input, shape index: {}]   ;;  %s457_s7 = inlined_call_operand.vmem [shape: f32[1,32], index: 7, kind: input, shape index: {}]   ;;  %s458_s8 = inlined_call_operand.<no memory space> [shape: f32[1], index: 8, kind: input, shape index: {}]   ;;  %s459_s9 = inlined_call_operand.hbm [shape: f32[1,16], index: 9, kind: output, shape index: {}]  }
   0x1   :  { %16 = vsyncpa [#allocation7], 0 }
   0x2   :  { %17 = vsyncpa [#allocation5], 0  ;;  %s26_s11 = sshll.u32 %s452_s2, 4  ;;  %s355_s12 = smov [#allocation3]   ;;  %s27_s11 = int_to_ptr.hbm [resolvable:$true] %s26_s11 }
   0x3   :  { %s28_s13 = sshll.u32 %s355_s12, 4  ;;  %s43_s16 = sshll.u32 %s455_s5, 4  ;;  %s29_s13 = int_to_ptr.vmem [resolvable:$true] %s28_s13  ;;  %s44_s16 = int_to_ptr.hbm [resolvable:$true] %s43_s16 }
   0x4   :  { %s356_s17 = smov 128   ;;  %s357_s18 = smov 8  }
   0x5   :  { %34 = dma.hbm_to_vmem [thread:$0]  %s27_s11, 256, %s29_s13, [#allocation4], %s356_s17, %s356_s17, %s357_s18  }
   0x6   :  { %s358_s19 = smov [#allocation6]  }
   0x7   :  { %s45_s20 = sshll.u32 %s358_s19, 4  ;;  %s46_s20 = int_to_ptr.vmem [resolvable:$true] %s45_s20 }
   0x8   :  { %51 = dma.hbm_to_vmem [thread:$0]  %s44_s16, 512, %s46_s20, [#allocation7], %s356_s17, %s356_s17, %s357_s18  }
   0x9   :  { %349 = dma.done.wait [#allocation4], 256  }
   0xa   :  { %350 = vsyncadd [#allocation4], 4294967040 }
   0xb   :  { %351 = dma.done.wait [#allocation7], 512  }
   0xc   :  { %352 = vsyncadd [#allocation7], 4294966784  ;;  %vm80_vm0 = vcmask 1043456   ;;  %vm73_vm1 = vcmask 31744   ;;  %v69_v0 = vld [vmem:[#allocation3 + $0x8] sm:$0xf]  ;;  %v201_v34 = vstv %s458_s8 }
   0xd   :  { %v72_v1 = vld [vmem:[%s453_s3] sm:$0xf]  ;;  %259 = vmatpush.msk.msra.mxu1 %vm80_vm0, %v69_v0  ;;  %vm107_vm2 = vcmask 97280   ;;  %v71_v5 = vld [vmem:[%s451_s1 + $0x8] sm:$0xff]  ;;  %v149_v9 = vld [vmem:[#allocation6 + $0x8] sm:$0xff]  ;;  %vm156_vm3 = vcmask 261120  }
   0xe   :  { %v68_v2 = vld [vmem:[#allocation3] sm:$0xff]  ;;  %256 = vmatpush.msk.msra.mxu0 %vm80_vm0, %v72_v1  ;;  %v67_v6 = vld [vmem:[%s450_s0 + $0x8] sm:$0xff]  ;;  %v148_v10 = vld [vmem:[#allocation6] sm:$0xff]  ;;  %s245_s14 = sshll.u32 %s459_s9, 4  ;;  %vm236_vm4 = vcmask 122880   ;;  %s246_s14 = int_to_ptr.hbm [resolvable:$true] %s245_s14 }
   0xf   :  { %v70_v3 = vld [vmem:[%s451_s1] sm:$0xff]  ;;  %132 = vmatpush.msra.mxu1 %v68_v2  ;;  %v151_v7 = vld [vmem:[#allocation6 + $0x18] sm:$0xff] }
  0x10   :  { %v66_v4 = vld [vmem:[%s450_s0] sm:$0xff]  ;;  %257 = vmatmul.msk.f32.vlgmr.msra.gmra.mxu0 %vm73_vm1, %v70_v3  ;;  %175 = vmatpush.msra.mxu2 %v151_v7 }
  0x11   :  { %260 = vmatmul.msk.f32.vlgmr.msra.gmra.mxu1 %vm107_vm2, %v66_v4  ;;  %264 = vmatpush.msra.mxu3 %v151_v7  ;;  %v150_v8 = vld [vmem:[#allocation6 + $0x10] sm:$0xff] }
  0x12   :  { %176 = vmatpush.msra.mxu2 %v150_v8  ;;  %v274_v12 = vld [vmem:[%s454_s4] ss:$0 sm:$0xff] }
  0x13   :  { %265 = vmatpush.msra.mxu3 %v150_v8  ;;  %v275_v22 = vld [vmem:[%s456_s6] ss:$0 sm:$0xff] }
  0x14   :  { %177 = vmatpush.msra.mxu2 %v149_v9  ;;  %v276_v25 = vld [vmem:[%s457_s7] ss:$0 sm:$0xff]  ;;  %s359_s7 = smov [#allocation8]  }
  0x15   :  { %266 = vmatpush.msra.mxu3 %v149_v9  ;;  %s243_s11 = sshll.u32 %s359_s7, 4  ;;  %s244_s11 = int_to_ptr.vmem [resolvable:$true] %s243_s11 }
  0x16   :  { %178 = vmatpush.msra.mxu2 %v148_v10 }
  0x17   :  { %267 = vmatpush.msra.mxu3 %v148_v10 }
  0x18   :  { %258 = vmatmul.msk.f32.gmra.mxu0 %vm73_vm1, %v71_v5 }
  0x19   :  { %261 = vmatmul.msk.f32.gmra.mxu1 %vm107_vm2, %v67_v6 }
  0x8d   :  { %v101_v11 = vpop.f32.mrf.mxu0 }
  0x8e   :  { %v134_v13 = vpop.f32.mrf.mxu1 }
  0x8f   :  { %v135_v14 = vadd.f32 %v134_v13, %v101_v11 }
  0x91   :  { %v144_v15 = vadd.f32 %v274_v12, %v135_v14 }
  0x93   :  { %v146_v16 = vmax.f32 %v144_v15, 0.0 }
  0x95   :  { %v104_v17 = vpop.f32.mrf.mxu0  ;;  %262 = vmatmul.msk.f32.vlgmr.msra.gmra.mxu2 %vm156_vm3, %v146_v16 }
  0x96   :  { %v137_v18 = vpop.f32.mrf.mxu1 }
  0x97   :  { %v138_v19 = vadd.f32 %v137_v18, %v104_v17 }
  0x99   :  { %v145_v20 = vadd.f32 %v274_v12, %v138_v19 }
  0x9b   :  { %v147_v21 = vmax.f32 %v145_v20, 0.0 }
  0x9d   :  { %263 = vmatmul.msk.f32.vlgmr.msra.gmra.mxu3 %vm156_vm3, %v147_v21 }
 0x118   :  { %v180_v23 = vpop.f32.mrf.mxu2 }
 0x119   :  { %v181_v24 = vadd.f32 %v275_v22, %v180_v23 }
 0x11b   :  { %v186_v26 = vmax.f32 %v181_v24, 0.0 }
 0x11d   :  { %v192_v27 = vmul.f32 %v276_v25, %v186_v26 }
 0x11f   :  { %v194_v28 = vsel %vm156_vm3, %v192_v27, 0.0 }
 0x120   :  { %v183_v29 = vpop.f32.mrf.mxu3  ;;  %195 = vadd.xlane.f32.xlu0 %v194_v28 }
 0x121   :  { %v184_v30 = vadd.f32 %v275_v22, %v183_v29 }
 0x123   :  { %v187_v31 = vmax.f32 %v184_v30, 0.0 }
 0x125   :  { %v193_v32 = vmul.f32 %v276_v25, %v187_v31 }
 0x127   :  { %v197_v33 = vsel %vm156_vm3, %v193_v32, 0.0 }
 0x128   :  { %198 = vadd.xlane.f32.xlu0 %v197_v33 }
 0x193   :  { %v196_v35 = vpop.xlane.xlu0 %195 }
 0x194   :  { %v202_v36 = vadd.f32 %v201_v34, %v196_v35 }
 0x196   :  { %204 = vxpose.xlu1.b32.start [1/2] (short) (narrow) %v202_v36, 8 }
 0x19b   :  { %v199_v37 = vpop.xlane.xlu0 %198 }
 0x19c   :  { %v203_v38 = vadd.f32 %v201_v34, %v199_v37 }
 0x19e   :  { %205 = vxpose.xlu1.b32.end [2/2] (short) (narrow) %v203_v38, 8 }
 0x23a   :  { %v220_v39 = vpop.trf.xlu1 }
 0x23b   :  { %237 = vst.msk [vmem:[#allocation8] sm:$0x1] %vm236_vm4, %v220_v39 }
 0x23c   :  { %248 = dma.vmem_to_hbm [thread:$0]  %s244_s11, 16, %s246_s14, [#allocation5]  }
 0x23d   :  { %353 = dma.done.wait [#allocation5], 16  }
 0x23e   :  { %354 = vsyncadd [#allocation5], 4294967280 }
 0x23f   :  { %253 = vsyncpa [#allocation4], 1 }
 0x240   :  { %254 = vsyncpa [#allocation7], 1 }
 0x241   :  { %255 = vsyncpa [#allocation5], 1 }

</bundles_post_ra>
